<compile_context>
chip_gen: v7x
topology: tpu7x:2x2x1
jax: 0.10.0
libtpu: 0.0.40
codegen_flags: <defaults>
</compile_context>

<pallas_src>
import functools

import jax
import jax.numpy as jnp
import numpy as np
from jax import lax
from jax.experimental import pallas as pl
from jax.experimental.pallas import tpu as pltpu


# ----------------------------------------------------------------------------
# Tiling knobs
# ----------------------------------------------------------------------------
_MAX_TILE_B = 512        # rows per grid step (amortizes ~0.35us/step overhead)
_MIN_SPLIT_TILE_B = 64   # only split batch for dual-TC if each tile keeps >=64 rows
_MAX_TILE_P = 2048       # output-feature tile for very large img_dim (v7x 64 MiB VMEM)


def _round_up(x, m):
    return ((x + m - 1) // m) * m


def _choose_batch_tiling(batch):
    """Return (tile_b, padded_batch). tile_b is a multiple of 16 (bf16 sublanes)."""
    b16 = max(16, _round_up(batch, 16))
    n = -(-b16 // _MAX_TILE_B)                       # tiles needed to respect cap
    if n < 2 and b16 >= 2 * _MIN_SPLIT_TILE_B:
        n = 2                                        # v7x: >=2 grid steps -> both TCs busy
    tile = _round_up(-(-b16 // n), 16)
    return tile, tile * n


def _choose_p_tiling(p):
    """Return (tile_p, padded_p). Both multiples of 128 (lane-dense stores)."""
    p128 = _round_up(p, 128)
    n = -(-p128 // _MAX_TILE_P)
    tile = _round_up(-(-p128 // n), 128)
    return tile, tile * n


# ----------------------------------------------------------------------------
# Pallas kernel: fused 4-layer MLP  (Linear->ReLU) x3 -> Linear -> Sigmoid
# with the class-embedding path expressed as onehot(c) @ class_bias_table.
# ----------------------------------------------------------------------------
def _decoder_mlp_kernel(z_ref, c_ref,
                        w1z_ref, cls_ref,
                        w2_ref, b2_ref,
                        w3_ref, b3_ref,
                        w4_ref, b4_ref,
                        o_ref):
    z = z_ref[...].astype(jnp.bfloat16)                  # (TB, latent)
    c = c_ref[...]                                       # (TB, 1) int32
    tb = z.shape[0]
    cls_pad = cls_ref.shape[0]

    # onehot(c) over the padded class axis (rows >= num_classes are zero in the
    # table and never selected for valid inputs).
    cls_iota = lax.broadcasted_iota(jnp.int32, (tb, cls_pad), 1)
    onehot = (cls_iota == c).astype(jnp.float32)         # (TB, cls_pad)

    # Layer 1: z-path (bf16 MXU) + class-bias path (f32 table, b1 folded in).
    h = jnp.dot(z, w1z_ref[...], preferred_element_type=jnp.float32)
    h = h + jnp.dot(onehot, cls_ref[...], preferred_element_type=jnp.float32)
    h = jnp.maximum(h, 0.0)                              # ReLU

    # Layer 2
    h = jnp.dot(h.astype(jnp.bfloat16), w2_ref[...],
                preferred_element_type=jnp.float32) + b2_ref[...]
    h = jnp.maximum(h, 0.0)

    # Layer 3
    h = jnp.dot(h.astype(jnp.bfloat16), w3_ref[...],
                preferred_element_type=jnp.float32) + b3_ref[...]
    h = jnp.maximum(h, 0.0)

    # Layer 4 + Sigmoid: 1 / (1 + exp(-x)), reciprocal routed to the EUP slot.
    h = jnp.dot(h.astype(jnp.bfloat16), w4_ref[...],
                preferred_element_type=jnp.float32) + b4_ref[...]
    o_ref[...] = pl.reciprocal(1.0 + jnp.exp(-h), approx=True).astype(o_ref.dtype)


# ----------------------------------------------------------------------------
# Forward wrapper
# ----------------------------------------------------------------------------
@functools.partial(jax.jit, static_argnames=("img_dim",))
def decoder_forward(z, c, prepared, img_dim):
    """Equivalent of Decoder.forward(z, c) using prepared (folded) params."""
    B, latent = z.shape
    P = int(np.prod(img_dim))
    cls_pad = prepared["cls"].shape[0]

    tile_b, B_pad = _choose_batch_tiling(B)
    tile_p, P_pad = _choose_p_tiling(P)
    assert prepared["w4"].shape == (512, P_pad), prepared["w4"].shape

    if B_pad != B:
        z = jnp.pad(z, ((0, B_pad - B), (0, 0)))
        c = jnp.pad(c, ((0, B_pad - B),))
    c2 = c.reshape(B_pad, 1).astype(jnp.int32)

    nb = B_pad // tile_b
    n_p = P_pad // tile_p
    grid = (nb, n_p)

    # Advisory cost estimate so XLA schedules surrounding ops sensibly.
    # Layers 1-3 are recomputed once per P-tile; layer 4 covers P_pad total.
    flops = 2 * B_pad * ((latent * 128 + cls_pad * 128
                          + 128 * 256 + 256 * 512) * n_p + 512 * P_pad)
    weight_bytes = sum(int(prepared[k].size) * prepared[k].dtype.itemsize
                       for k in ("w1z", "cls", "w2", "b2", "w3", "b3", "w4", "b4"))
    bytes_accessed = weight_bytes + z.size * 4 + c2.size * 4 + B_pad * P_pad * 2
    cost = pl.CostEstimate(flops=int(flops),
                           transcendentals=int(B_pad * P_pad),
                           bytes_accessed=int(bytes_accessed))

    const = lambda i, j: (0, 0)        # layers 1-3 weights: VMEM-resident
    by_b = lambda i, j: (i, 0)         # activations: tiled over batch
    by_p = lambda i, j: (0, j)         # layer-4 weights: tiled over output features
    by_bp = lambda i, j: (i, j)        # output: tiled over both

    flat = pl.pallas_call(
        _decoder_mlp_kernel,
        out_shape=jax.ShapeDtypeStruct((B_pad, P_pad), jnp.bfloat16),
        grid_spec=pltpu.PrefetchScalarGridSpec(
            num_scalar_prefetch=0,
            grid=grid,
            in_specs=[
                pl.BlockSpec((tile_b, latent), by_b),   # z
                pl.BlockSpec((tile_b, 1), by_b),        # c (int32 column)
                pl.BlockSpec((latent, 128), const),     # W1[:latent]  (bf16)
                pl.BlockSpec((cls_pad, 128), const),    # class bias table (f32)
                pl.BlockSpec((128, 256), const),        # W2 (bf16)
                pl.BlockSpec((1, 256), const),          # b2 (f32)
                pl.BlockSpec((256, 512), const),        # W3 (bf16)
                pl.BlockSpec((1, 512), const),          # b3 (f32)
                pl.BlockSpec((512, tile_p), by_p),      # W4 (bf16, P-tiled)
                pl.BlockSpec((1, tile_p), by_p),        # b4 (f32, P-tiled)
            ],
            out_specs=pl.BlockSpec((tile_b, tile_p), by_bp),
        ),
        compiler_params=pltpu.CompilerParams(
            dimension_semantics=("parallel", "parallel")),  # v7x: shard over 2 TCs
        cost_estimate=cost,
    )(z, c2,
      prepared["w1z"], prepared["cls"],
      prepared["w2"], prepared["b2"],
      prepared["w3"], prepared["b3"],
      prepared["w4"], prepared["b4"])

    flat = flat[:B, :P].astype(jnp.float32)
    return flat.reshape((B,) + tuple(img_dim))              # NCHW


# ----------------------------------------------------------------------------
# Parameter construction (matches nn.Module shapes) + algebraic folding
# ----------------------------------------------------------------------------
def _linear_params(key, fan_in, fan_out):
    # PyTorch nn.Linear default init: U(-1/sqrt(fan_in), 1/sqrt(fan_in)).
    kw, kb = jax.random.split(key)
    bound = 1.0 / np.sqrt(fan_in)
    # Stored already transposed: (fan_in, fan_out) for x @ W.
    w = jax.random.uniform(kw, (fan_in, fan_out), jnp.float32, -bound, bound)
    b = jax.random.uniform(kb, (1, fan_out), jnp.float32, -bound, bound)
    return w, b


def make_decoder_params(key, latent_dim, img_dim, num_classes, batch_norm):
    keys = jax.random.split(key, 6)
    P = int(np.prod(img_dim))
    din = latent_dim + num_classes

    emb = jax.random.normal(keys[0], (num_classes, num_classes), jnp.float32)
    w1, b1 = _linear_params(keys[1], din, 128)
    w2, b2 = _linear_params(keys[2], 128, 256)
    w3, b3 = _linear_params(keys[3], 256, 512)
    w4, b4 = _linear_params(keys[4], 512, P)

    if batch_norm:
        # Fold eval-mode BatchNorm1d into the preceding Linear:
        #   W' = W * s, b' = (b - mean) * s + beta,  s = gamma / sqrt(var + eps)
        # TODO(synk): train-mode BatchNorm (batch statistics) is not modeled.
        eps = 1e-5
        bn_key = jax.random.split(keys[5], 3)

        def fold(w, b, dim, k):
            k1, k2, k3 = jax.random.split(k, 3)
            gamma = 1.0 + 0.1 * jax.random.normal(k1, (dim,), jnp.float32)
            beta = 0.1 * jax.random.normal(k2, (dim,), jnp.float32)
            mean = 0.05 * jax.random.normal(k3, (dim,), jnp.float32)
            var = jnp.ones((dim,), jnp.float32)
            s = gamma / jnp.sqrt(var + eps)
            return w * s[None, :], (b - mean[None, :]) * s[None, :] + beta[None, :]

        w1, b1 = fold(w1, b1, 128, bn_key[0])
        w2, b2 = fold(w2, b2, 256, bn_key[1])
        w3, b3 = fold(w3, b3, 512, bn_key[2])

    return dict(emb=emb, w1=w1, b1=b1, w2=w2, b2=b2, w3=w3, b3=b3, w4=w4, b4=b4)


def prepare_decoder_params(params, latent_dim, num_classes, img_dim):
    """Fold embedding + b1 into a per-class bias table (kept f32); cast weights
    to bf16; pad W4/b4 columns to the lane-dense / P-tiled width."""
    P = int(np.prod(img_dim))
    _, P_pad = _choose_p_tiling(P)

    w1 = params["w1"]
    w1z = w1[:latent_dim, :]                                    # (latent, 128)
    w1c = w1[latent_dim:, :]                                    # (num_classes, 128)
    cls_table = params["emb"] @ w1c + params["b1"]              # (num_classes, 128)
    cls_pad = _round_up(num_classes, 128)
    if num_classes < cls_pad:
        cls_table = jnp.pad(cls_table, ((0, cls_pad - num_classes), (0, 0)))

    w4, b4 = params["w4"], params["b4"]
    if P_pad != P:
        w4 = jnp.pad(w4, ((0, 0), (0, P_pad - P)))
        b4 = jnp.pad(b4, ((0, 0), (0, P_pad - P)))

    return dict(
        w1z=w1z.astype(jnp.bfloat16),
        cls=cls_table.astype(jnp.float32),          # f32: consistent layer-1 precision
        w2=params["w2"].astype(jnp.bfloat16), b2=params["b2"],
        w3=params["w3"].astype(jnp.bfloat16), b3=params["b3"],
        w4=w4.astype(jnp.bfloat16), b4=b4,
    )


# ----------------------------------------------------------------------------
# Pure-JAX reference (f32) for a correctness check
# ----------------------------------------------------------------------------
def decoder_reference(z, c, params, img_dim):
    emb = jnp.take(params["emb"], c, axis=0)
    x = jnp.concatenate([z, emb], axis=1)
    h = jnp.maximum(x @ params["w1"] + params["b1"], 0.0)
    h = jnp.maximum(h @ params["w2"] + params["b2"], 0.0)
    h = jnp.maximum(h @ params["w3"] + params["b3"], 0.0)
    h = jax.nn.sigmoid(h @ params["w4"] + params["b4"])
    return h.reshape((z.shape[0],) + tuple(img_dim))


# ----------------------------------------------------------------------------
if __name__ == "__main__":
    latent_dim = 16
    num_classes = 10
    img_dim = (1, 16, 16)          # (C, H, W), prod = 256
    batch = 8
    batch_norm = False             # matches Decoder(..., batch_norm=False)

    key = jax.random.PRNGKey(0)
    k_params, k_z, k_c = jax.random.split(key, 3)

    params = make_decoder_params(k_params, latent_dim, img_dim, num_classes,
                                 batch_norm)
    prepared = prepare_decoder_params(params, latent_dim, num_classes, img_dim)

    z = jax.random.normal(k_z, (batch, latent_dim), jnp.float32)
    c = jax.random.randint(k_c, (batch,), 0, num_classes, jnp.int32)

    x_hat = decoder_forward(z, c, prepared, img_dim)
    x_hat = jax.block_until_ready(x_hat)

    assert x_hat.shape == (batch,) + img_dim, x_hat.shape
    assert bool(jnp.all((x_hat >= 0.0) & (x_hat <= 1.0)))      # sigmoid range

    # bf16-weight / bf16-output kernel vs f32 reference: loose tolerance.
    ref = decoder_reference(z, c, params, img_dim)
    max_err = float(jnp.max(jnp.abs(x_hat - ref)))
    assert max_err < 5e-2, f"max abs err vs reference: {max_err}"

    print("KERNEL_OK")
</pallas_src>

<mosaic_0001>
module attributes {stable_mosaic.version = 11 : i64} {
  func.func @_decoder_mlp_kernel(%arg0: i32, %arg1: i32, %arg2: memref<16x16xf32, #tpu.memory_space<vmem>>, %arg3: memref<16x1xi32, #tpu.memory_space<vmem>>, %arg4: memref<16x128xbf16, #tpu.memory_space<vmem>>, %arg5: memref<128x128xf32, #tpu.memory_space<vmem>>, %arg6: memref<128x256xbf16, #tpu.memory_space<vmem>>, %arg7: memref<1x256xf32, #tpu.memory_space<vmem>>, %arg8: memref<256x512xbf16, #tpu.memory_space<vmem>>, %arg9: memref<1x512xf32, #tpu.memory_space<vmem>>, %arg10: memref<512x256xbf16, #tpu.memory_space<vmem>>, %arg11: memref<1x256xf32, #tpu.memory_space<vmem>>, %arg12: memref<16x256xbf16, #tpu.memory_space<vmem>>) attributes {dimension_semantics = [#tpu.dimension_semantics<parallel>, #tpu.dimension_semantics<parallel>], iteration_bounds = array<i64: 1, 1>, scalar_prefetch = 0 : i64, scratch_operands = 0 : i64, tpu.core_type = #tpu.core_type<tc>, window_params = [{transform_indices = @transform_0, window_bounds = array<i64: 16, 16>}, {transform_indices = @transform_1, window_bounds = array<i64: 16, 1>}, {pipeline_mode = #tpu.pipeline_mode<synchronous>, transform_indices = @transform_2, window_bounds = array<i64: 16, 128>}, {pipeline_mode = #tpu.pipeline_mode<synchronous>, transform_indices = @transform_3, window_bounds = array<i64: 128, 128>}, {pipeline_mode = #tpu.pipeline_mode<synchronous>, transform_indices = @transform_4, window_bounds = array<i64: 128, 256>}, {pipeline_mode = #tpu.pipeline_mode<synchronous>, transform_indices = @transform_5, window_bounds = array<i64: 1, 256>}, {pipeline_mode = #tpu.pipeline_mode<synchronous>, transform_indices = @transform_6, window_bounds = array<i64: 256, 512>}, {pipeline_mode = #tpu.pipeline_mode<synchronous>, transform_indices = @transform_7, window_bounds = array<i64: 1, 512>}, {transform_indices = @transform_8, window_bounds = array<i64: 512, 256>}, {transform_indices = @transform_9, window_bounds = array<i64: 1, 256>}, {transform_indices = @transform_10, window_bounds = array<i64: 16, 256>}]} {
    %c0 = arith.constant 0 : index
    %c0_0 = arith.constant 0 : index
    %0 = vector.load %arg2[%c0, %c0_0] : memref<16x16xf32, #tpu.memory_space<vmem>>, vector<16x16xf32>
    %1 = arith.truncf %0 : vector<16x16xf32> to vector<16x16xbf16>
    %c0_1 = arith.constant 0 : index
    %c0_2 = arith.constant 0 : index
    %2 = vector.load %arg3[%c0_1, %c0_2] : memref<16x1xi32, #tpu.memory_space<vmem>>, vector<16x1xi32>
    %3 = tpu.iota {dimensions = array<i32: 1>} : vector<16x128xi32>
    %4 = vector.broadcast %2 : vector<16x1xi32> to vector<16x128xi32>
    %5 = arith.cmpi eq, %3, %4 : vector<16x128xi32>
    %6 = arith.extui %5 : vector<16x128xi1> to vector<16x128xi32>
    %7 = arith.sitofp %6 : vector<16x128xi32> to vector<16x128xf32>
    %c0_3 = arith.constant 0 : index
    %c0_4 = arith.constant 0 : index
    %8 = vector.load %arg4[%c0_3, %c0_4] : memref<16x128xbf16, #tpu.memory_space<vmem>>, vector<16x128xbf16>
    %cst = arith.constant dense<0.000000e+00> : vector<16x128xf32>
    %9 = tpu.matmul %1, %8, %cst {dimension_numbers = #tpu.dot_dimension_numbers<[1], [0], [0], [1], [0, 0, 1, 1], [], []>} : vector<16x16xbf16>, vector<16x128xbf16>, vector<16x128xf32> -> vector<16x128xf32>
    %c0_5 = arith.constant 0 : index
    %c0_6 = arith.constant 0 : index
    %10 = vector.load %arg5[%c0_5, %c0_6] : memref<128x128xf32, #tpu.memory_space<vmem>>, vector<128x128xf32>
    %cst_7 = arith.constant dense<0.000000e+00> : vector<16x128xf32>
    %11 = tpu.matmul %7, %10, %cst_7 {dimension_numbers = #tpu.dot_dimension_numbers<[1], [0], [0], [1], [0, 0, 1, 1], [], []>} : vector<16x128xf32>, vector<128x128xf32>, vector<16x128xf32> -> vector<16x128xf32>
    %12 = arith.addf %9, %11 : vector<16x128xf32>
    %cst_8 = arith.constant 0.000000e+00 : f32
    %13 = vector.broadcast %cst_8 : f32 to vector<16x128xf32>
    %14 = arith.maximumf %12, %13 : vector<16x128xf32>
    %15 = arith.truncf %14 : vector<16x128xf32> to vector<16x128xbf16>
    %c0_9 = arith.constant 0 : index
    %c0_10 = arith.constant 0 : index
    %16 = vector.load %arg6[%c0_9, %c0_10] : memref<128x256xbf16, #tpu.memory_space<vmem>>, vector<128x256xbf16>
    %cst_11 = arith.constant dense<0.000000e+00> : vector<16x256xf32>
    %17 = tpu.matmul %15, %16, %cst_11 {dimension_numbers = #tpu.dot_dimension_numbers<[1], [0], [0], [1], [0, 0, 1, 1], [], []>} : vector<16x128xbf16>, vector<128x256xbf16>, vector<16x256xf32> -> vector<16x256xf32>
    %c0_12 = arith.constant 0 : index
    %c0_13 = arith.constant 0 : index
    %18 = vector.load %arg7[%c0_12, %c0_13] : memref<1x256xf32, #tpu.memory_space<vmem>>, vector<1x256xf32>
    %19 = vector.broadcast %18 : vector<1x256xf32> to vector<16x256xf32>
    %20 = arith.addf %17, %19 : vector<16x256xf32>
    %cst_14 = arith.constant 0.000000e+00 : f32
    %21 = vector.broadcast %cst_14 : f32 to vector<16x256xf32>
    %22 = arith.maximumf %20, %21 : vector<16x256xf32>
    %23 = arith.truncf %22 : vector<16x256xf32> to vector<16x256xbf16>
    %c0_15 = arith.constant 0 : index
    %c0_16 = arith.constant 0 : index
    %24 = vector.load %arg8[%c0_15, %c0_16] : memref<256x512xbf16, #tpu.memory_space<vmem>>, vector<256x512xbf16>
    %cst_17 = arith.constant dense<0.000000e+00> : vector<16x512xf32>
    %25 = tpu.matmul %23, %24, %cst_17 {dimension_numbers = #tpu.dot_dimension_numbers<[1], [0], [0], [1], [0, 0, 1, 1], [], []>} : vector<16x256xbf16>, vector<256x512xbf16>, vector<16x512xf32> -> vector<16x512xf32>
    %c0_18 = arith.constant 0 : index
    %c0_19 = arith.constant 0 : index
    %26 = vector.load %arg9[%c0_18, %c0_19] : memref<1x512xf32, #tpu.memory_space<vmem>>, vector<1x512xf32>
    %27 = vector.broadcast %26 : vector<1x512xf32> to vector<16x512xf32>
    %28 = arith.addf %25, %27 : vector<16x512xf32>
    %cst_20 = arith.constant 0.000000e+00 : f32
    %29 = vector.broadcast %cst_20 : f32 to vector<16x512xf32>
    %30 = arith.maximumf %28, %29 : vector<16x512xf32>
    %31 = arith.truncf %30 : vector<16x512xf32> to vector<16x512xbf16>
    %c0_21 = arith.constant 0 : index
    %c0_22 = arith.constant 0 : index
    %32 = vector.load %arg10[%c0_21, %c0_22] : memref<512x256xbf16, #tpu.memory_space<vmem>>, vector<512x256xbf16>
    %cst_23 = arith.constant dense<0.000000e+00> : vector<16x256xf32>
    %33 = tpu.matmul %31, %32, %cst_23 {dimension_numbers = #tpu.dot_dimension_numbers<[1], [0], [0], [1], [0, 0, 1, 1], [], []>} : vector<16x512xbf16>, vector<512x256xbf16>, vector<16x256xf32> -> vector<16x256xf32>
    %c0_24 = arith.constant 0 : index
    %c0_25 = arith.constant 0 : index
    %34 = vector.load %arg11[%c0_24, %c0_25] : memref<1x256xf32, #tpu.memory_space<vmem>>, vector<1x256xf32>
    %35 = vector.broadcast %34 : vector<1x256xf32> to vector<16x256xf32>
    %36 = arith.addf %33, %35 : vector<16x256xf32>
    %cst_26 = arith.constant 0.000000e+00 : f32
    %37 = vector.broadcast %cst_26 : f32 to vector<16x256xf32>
    %38 = arith.subf %37, %36 : vector<16x256xf32>
    %39 = math.exp %38 : vector<16x256xf32>
    %cst_27 = arith.constant 1.000000e+00 : f32
    %40 = vector.broadcast %cst_27 : f32 to vector<16x256xf32>
    %41 = arith.addf %40, %39 : vector<16x256xf32>
    %42 = tpu.reciprocal %41 {approx = true} : vector<16x256xf32> -> vector<16x256xf32>
    %43 = arith.truncf %42 : vector<16x256xf32> to vector<16x256xbf16>
    %c0_28 = arith.constant 0 : index
    %c0_29 = arith.constant 0 : index
    %44 = vector.load %arg12[%c0_28, %c0_29] : memref<16x256xbf16, #tpu.memory_space<vmem>>, vector<16x256xbf16>
    tpu.vector_store %arg12[%c0_28, %c0_29], %43 {strides = array<i32>} : memref<16x256xbf16, #tpu.memory_space<vmem>>, vector<16x256xbf16>,
    return
  }
  func.func @transform_0(%arg0: i32, %arg1: i32) -> (i32, i32) {
    %c0_i32 = arith.constant 0 : i32
    %c0_i32_0 = arith.constant 0 : i32
    return %arg0, %c0_i32 : i32, i32
  }
  func.func @transform_1(%arg0: i32, %arg1: i32) -> (i32, i32) {
    %c0_i32 = arith.constant 0 : i32
    %c0_i32_0 = arith.constant 0 : i32
    return %arg0, %c0_i32 : i32, i32
  }
  func.func @transform_2(%arg0: i32, %arg1: i32) -> (i32, i32) {
    %c0_i32 = arith.constant 0 : i32
    %c0_i32_0 = arith.constant 0 : i32
    %c0_i32_1 = arith.constant 0 : i32
    return %c0_i32, %c0_i32_0 : i32, i32
  }
  func.func @transform_3(%arg0: i32, %arg1: i32) -> (i32, i32) {
    %c0_i32 = arith.constant 0 : i32
    %c0_i32_0 = arith.constant 0 : i32
    %c0_i32_1 = arith.constant 0 : i32
    return %c0_i32, %c0_i32_0 : i32, i32
  }
  func.func @transform_4(%arg0: i32, %arg1: i32) -> (i32, i32) {
    %c0_i32 = arith.constant 0 : i32
    %c0_i32_0 = arith.constant 0 : i32
    %c0_i32_1 = arith.constant 0 : i32
    return %c0_i32, %c0_i32_0 : i32, i32
  }
  func.func @transform_5(%arg0: i32, %arg1: i32) -> (i32, i32) {
    %c0_i32 = arith.constant 0 : i32
    %c0_i32_0 = arith.constant 0 : i32
    %c0_i32_1 = arith.constant 0 : i32
    return %c0_i32, %c0_i32_0 : i32, i32
  }
  func.func @transform_6(%arg0: i32, %arg1: i32) -> (i32, i32) {
    %c0_i32 = arith.constant 0 : i32
    %c0_i32_0 = arith.constant 0 : i32
    %c0_i32_1 = arith.constant 0 : i32
    return %c0_i32, %c0_i32_0 : i32, i32
  }
  func.func @transform_7(%arg0: i32, %arg1: i32) -> (i32, i32) {
    %c0_i32 = arith.constant 0 : i32
    %c0_i32_0 = arith.constant 0 : i32
    %c0_i32_1 = arith.constant 0 : i32
    return %c0_i32, %c0_i32_0 : i32, i32
  }
  func.func @transform_8(%arg0: i32, %arg1: i32) -> (i32, i32) {
    %c0_i32 = arith.constant 0 : i32
    %c0_i32_0 = arith.constant 0 : i32
    return %c0_i32, %arg1 : i32, i32
  }
  func.func @transform_9(%arg0: i32, %arg1: i32) -> (i32, i32) {
    %c0_i32 = arith.constant 0 : i32
    %c0_i32_0 = arith.constant 0 : i32
    return %c0_i32, %arg1 : i32, i32
  }
  func.func @transform_10(%arg0: i32, %arg1: i32) -> (i32, i32) {
    %c0_i32 = arith.constant 0 : i32
    return %arg0, %arg1 : i32, i32
  }
}

</mosaic_0001>

<bundles_post_ra>
// kernel: decoder_forward.1
= control target key start
LH: loop header
LB: loop body
LE: loop exit
PB: predicated region body
PF: predicated region fallthrough
CT: control target
= control target key end

     0   :  { %15 = vsyncpa [#allocation3], 0  ;;  %s2225_s0 = inlined_call_operand.vmem [shape: f32[16,16], index: 0, kind: input, shape index: {}]   ;;  %s2226_s1 = inlined_call_operand.vmem [shape: s32[16,1], index: 1, kind: input, shape index: {}]   ;;  %s2227_s2 = inlined_call_operand.vmem [shape: bf16[16,128], index: 2, kind: input, shape index: {}]   ;;  %s2228_s3 = inlined_call_operand.hbm [shape: f32[128,128], index: 3, kind: input, shape index: {}]   ;;  %s2229_s4 = inlined_call_operand.hbm [shape: bf16[128,256], index: 4, kind: input, shape index: {}]   ;;  %s2230_s5 = inlined_call_operand.vmem [shape: f32[1,256], index: 5, kind: input, shape index: {}]   ;;  %s2231_s6 = inlined_call_operand.hbm [shape: bf16[256,512], index: 6, kind: input, shape index: {}]   ;;  %s2232_s7 = inlined_call_operand.vmem [shape: f32[1,512], index: 7, kind: input, shape index: {}]   ;;  %s2233_s8 = inlined_call_operand.hbm [shape: bf16[512,256], index: 8, kind: input, shape index: {}]   ;;  %s2234_s9 = inlined_call_operand.vmem [shape: f32[1,256], index: 9, kind: input, shape index: {}]   ;;  %s2235_s10 = inlined_call_operand.vmem [shape: bf16[16,256], index: 10, kind: output, shape index: {}]  }
   0x1   :  { %16 = vsyncpa [#allocation5], 0 }
   0x2   :  { %17 = vsyncpa [#allocation8], 0  ;;  %s2036_s13 = smov [#allocation4]   ;;  %s2037_s15 = smov [#allocation2]  }
   0x3   :  { %s41_s14 = sshll.u32 %s2036_s13, 4  ;;  %s29_s16 = sshll.u32 %s2037_s15, 4  ;;  %s42_s14 = int_to_ptr.vmem [resolvable:$true] %s41_s14  ;;  %s2103_s16 = int_to_ptr.vmem [resolvable:$true] %s29_s16 }
   0x4   :  { %s1942_s19 = scalar_lea.hbm %s2229_s4, 2048 }
   0x5   :  { %p1943_p0 = scmp.ne.s32.totalorder %s2229_s4, %s1942_s19  ;;  %p1946_p1 = scmp.lt.u32.totalorder %s1942_s19, %s2229_s4 }
   0x7   :  { %p1948_p2 = pnand %p1946_p1, %p1943_p0 }
   0x9   :  { %1951 = shalt.err (!%p1948_p2)
}
   0xa   :  { %s1952_s24 = scalar_lea.vmem %s42_s14, 2048  ;;  %p1957_p4 = scmp.lt.s32.totalorder %s42_s14, %s42_s14 }
   0xb   :  { %p1953_p3 = scmp.ne.s32.totalorder %s42_s14, %s1952_s24  ;;  %p1958_p5 = scmp.lt.s32.totalorder %s1952_s24, %s1952_s24 }
   0xd   :  { %p1959_p6 = por %p1958_p5, %p1957_p4 }
   0xf   :  { %p1960_p7 = pnand %p1959_p6, %p1953_p3 }
  0x11   :  { %1963 = shalt.err (!%p1960_p7)
}
  0x12   :  { %s2038_s25 = smov 128   ;;  %s2039_s26 = smov 8  }
  0x13   :  { %47 = dma.hbm_to_vmem [thread:$0]  %s2229_s4, 2048, %s42_s14, [#allocation5], %s2038_s25, %s2038_s25, %s2039_s26  }
  0x14   :  { %s1964_s11 = scalar_lea.hbm %s2228_s3, 2048 }
  0x15   :  { %p1965_p8 = scmp.ne.s32.totalorder %s2228_s3, %s1964_s11  ;;  %p1968_p9 = scmp.lt.u32.totalorder %s1964_s11, %s2228_s3 }
  0x17   :  { %p1970_p10 = pnand %p1968_p9, %p1965_p8 }
  0x19   :  { %1973 = shalt.err (!%p1970_p10)
}
  0x1a   :  { %s1974_s18 = scalar_lea.vmem %s2103_s16, 2048  ;;  %p1979_p12 = scmp.lt.s32.totalorder %s2103_s16, %s2103_s16 }
  0x1b   :  { %p1975_p11 = scmp.ne.s32.totalorder %s2103_s16, %s1974_s18  ;;  %p1980_p13 = scmp.lt.s32.totalorder %s1974_s18, %s1974_s18 }
  0x1d   :  { %p1981_p0 = por %p1980_p13, %p1979_p12 }
  0x1f   :  { %p1982_p1 = pnand %p1981_p0, %p1975_p11 }
  0x21   :  { %1985 = shalt.err (!%p1982_p1)
}
  0x22   :  { %35 = dma.hbm_to_vmem [thread:$0]  %s2228_s3, 2048, %s2103_s16, [#allocation3], %s2038_s25, %s2038_s25, %s2039_s26  }
  0x23   :  { %s2040_s19 = smov [#allocation6]   ;;  %s1986_s23 = scalar_lea.hbm %s2231_s6, 8192 }
  0x24   :  { %s55_s20 = sshll.u32 %s2040_s19, 4  ;;  %p1987_p2 = scmp.ne.s32.totalorder %s2231_s6, %s1986_s23  ;;  %s56_s20 = int_to_ptr.vmem [resolvable:$true] %s55_s20 }
  0x25   :  { %p1990_p3 = scmp.lt.u32.totalorder %s1986_s23, %s2231_s6 }
  0x27   :  { %p1992_p4 = pnand %p1990_p3, %p1987_p2 }
  0x29   :  { %1995 = shalt.err (!%p1992_p4)
}
  0x2a   :  { %s1996_s30 = scalar_lea.vmem %s56_s20, 8192  ;;  %p2001_p6 = scmp.lt.s32.totalorder %s56_s20, %s56_s20 }
  0x2b   :  { %p1997_p5 = scmp.ne.s32.totalorder %s56_s20, %s1996_s30  ;;  %p2002_p7 = scmp.lt.s32.totalorder %s1996_s30, %s1996_s30 }
  0x2d   :  { %p2003_p8 = por %p2002_p7, %p2001_p6 }
  0x2f   :  { %p2004_p9 = pnand %p2003_p8, %p1997_p5 }
  0x31   :  { %2007 = shalt.err (!%p2004_p9)
}
  0x32   :  { %s2041_s3 = smov 256   ;;  %s2042_s16 = smov 16  }
  0x33   :  { %61 = dma.hbm_to_vmem [thread:$0]  %s2231_s6, 8192, %s56_s20, [#allocation5], %s2041_s3, %s2041_s3, %s2042_s16  }
  0x34   :  { %s2043_s13 = smov [#allocation7]   ;;  %s2008_s4 = scalar_lea.hbm %s2233_s8, 8192 }
  0x35   :  { %s69_s15 = sshll.u32 %s2043_s13, 4  ;;  %p2009_p10 = scmp.ne.s32.totalorder %s2233_s8, %s2008_s4  ;;  %s70_s15 = int_to_ptr.vmem [resolvable:$true] %s69_s15 }
  0x36   :  { %p2012_p11 = scmp.lt.u32.totalorder %s2008_s4, %s2233_s8 }
  0x38   :  { %p2014_p12 = pnand %p2012_p11, %p2009_p10 }
  0x3a   :  { %2017 = shalt.err (!%p2014_p12)
}
  0x3b   :  { %s2018_s23 = scalar_lea.vmem %s70_s15, 8192  ;;  %p2023_p0 = scmp.lt.s32.totalorder %s70_s15, %s70_s15 }
  0x3c   :  { %p2019_p13 = scmp.ne.s32.totalorder %s70_s15, %s2018_s23  ;;  %p2024_p1 = scmp.lt.s32.totalorder %s2018_s23, %s2018_s23 }
  0x3e   :  { %p2025_p2 = por %p2024_p1, %p2023_p0 }
  0x40   :  { %p2026_p3 = pnand %p2025_p2, %p2019_p13 }
  0x42   :  { %2029 = shalt.err (!%p2026_p3)
}
  0x43   :  { %75 = dma.hbm_to_vmem [thread:$0]  %s2233_s8, 8192, %s70_s15, [#allocation8], %s2038_s25, %s2038_s25, %s2039_s26  }
  0x44   :  { %2030 = dma.done.wait [#allocation3], 2048  }
  0x45   :  { %2031 = vsyncadd [#allocation3], 4294965248 }
  0x46   :  { %2032 = dma.done.wait [#allocation5], 10240  }
  0x47   :  { %2033 = vsyncadd [#allocation5], 4294957056 }
  0x48   :  { %2034 = dma.done.wait [#allocation8], 8192  }
  0x49   :  { %2035 = vsyncadd [#allocation8], 4294959104  ;;  %v2044_v0 = vmov 0   ;;  %v2045_v1 = vmov 0.0   ;;  %v94_v2 = vld [vmem:[%s2226_s1] sm:$0xff]  ;;  %v113_v4 = vld [vmem:[#allocation2 + $0x8] sm:$0xff]  ;;  %v96_v44 = vlaneseq }
  0x4a   :  { %1708 = vset.pattern.permute.xlu0 %v2044_v0  ;;  %1650 = vmatprep.subr.bf16.mxu1 %v2045_v1  ;;  %v112_v3 = vld [vmem:[#allocation2] sm:$0xff]  ;;  %v114_v5 = vld [vmem:[#allocation2 + $0x10] sm:$0xff]  ;;  %v115_v6 = vld [vmem:[#allocation2 + $0x18] sm:$0xff]  ;;  %vm2046_vm0 = vmmov 0   ;;  %vm209_vm1 = vcmask 130048   ;;  %v2047_v47 = vmov 1.0  }
  0x4b   :  { %99 = vperm.xlu0 %1708, %v94_v2   ;;  %1652 = vmatprep.mubr.msk.bf16.mxu1 %vm2046_vm0, %v2045_v1  ;;  %v95_v7 = vld [vmem:[%s2226_s1 + $0x8] sm:$0xff]  ;;  %v1656_v8 = vpack.c.bf16 %v113_v4, %v112_v3  ;;  %v1660_v9 = vpack.c.bf16 %v115_v6, %v114_v5  ;;  %v116_v10 = vld [vmem:[#allocation2 + $0x20] sm:$0xff]  ;;  %v118_v13 = vld [vmem:[#allocation2 + $0x30] sm:$0xff]  ;;  %v97_v45 = vand.u32 127, %v96_v44 }
  0x4c   :  { %v117_v11 = vld [vmem:[#allocation2 + $0x28] sm:$0xff]  ;;  %v119_v14 = vld [vmem:[#allocation2 + $0x38] sm:$0xff]  ;;  %v1709_v15 = vld [vmem:[%s2227_s2] sm:$0xff]  }
  0x4d   :  { %1657 = vmatprep.subr.bf16.mxu0 %v1656_v8  ;;  %v1664_v12 = vpack.c.bf16 %v117_v11, %v116_v10  ;;  %v91_v16 = vld [vmem:[%s2225_s0] sm:$0xff]  ;;  %v92_v17 = vld [vmem:[%s2225_s0 + $0x8] sm:$0xff]  ;;  %1651 = vmatpush3.bf16.msra.mxu1 %v1709_v15  ;;  %v1668_v21 = vpack.c.bf16 %v119_v14, %v118_v13  ;;  %v1715_v22 = vld [vmem:[#allocation4 + $0x14] ss:$8 sps:$4 sm:$0xff]  }
  0x4e   :  { %1659 = vmatpush3.bf16.msra.mxu0 %v1656_v8  ;;  %v93_v18 = vpack.c.bf16 %v92_v17, %v91_v16  ;;  %v1710_v19 = vld [vmem:[#allocation4] ss:$8 sps:$4 sm:$0xff]   ;;  %v1712_v20 = vld [vmem:[#allocation4 + $0x4] ss:$8 sps:$4 sm:$0xff]   ;;  %v1713_v25 = vld [vmem:[#allocation4 + $0x10] ss:$8 sps:$4 sm:$0xff]  }
  0x4f   :  { %102 = vperm.xlu0 %1708, %v95_v7   ;;  %1661 = vmatprep.subr.bf16.mxu0 %v1660_v9  ;;  %v120_v23 = vld [vmem:[#allocation2 + $0x40] sm:$0xff]  ;;  %v121_v24 = vld [vmem:[#allocation2 + $0x48] sm:$0xff]  ;;  %v122_v26 = vld [vmem:[#allocation2 + $0x50] sm:$0xff] }
  0x50   :  { %365 = vmatprep.subr.bf16.mxu1 %v1712_v20  ;;  %1653 = vmatmul.mubr.msk.bf16.vlgmr.msra.gmra.mrb[0].mxu1 %vm209_vm1, %v93_v18  ;;  %v123_v27 = vld [vmem:[#allocation2 + $0x58] sm:$0xff]  ;;  %v1718_v28 = vld [vmem:[#allocation4 + $0x24] ss:$8 sps:$4 sm:$0xff]   ;;  %v1672_v29 = vpack.c.bf16 %v121_v24, %v120_v23  ;;  %v1716_v30 = vld [vmem:[#allocation4 + $0x20] ss:$8 sps:$4 sm:$0xff]  }
  0x51   :  { %366 = vmatpush1.bf16.msra.mxu1 %v1710_v19  ;;  %397 = vmatprep.mubr.bf16.mxu1 %v2044_v0  ;;  %v1721_v31 = vld [vmem:[#allocation4 + $0x34] ss:$8 sps:$4 sm:$0xff]   ;;  %v124_v32 = vld [vmem:[#allocation2 + $0x60] sm:$0xff]  ;;  %v125_v33 = vld [vmem:[#allocation2 + $0x68] sm:$0xff]  ;;  %v1676_v34 = vpack.c.bf16 %v123_v27, %v122_v26 }
  0x52   :  { %1663 = vmatpush3.bf16.msra.mxu0 %v1660_v9  ;;  %367 = vmatprep.subr.bf16.mxu1 %v1715_v22  ;;  %v1719_v35 = vld [vmem:[#allocation4 + $0x30] ss:$8 sps:$4 sm:$0xff]   ;;  %v1724_v36 = vld [vmem:[#allocation4 + $0x44] ss:$8 sps:$4 sm:$0xff]   ;;  %v1680_v39 = vpack.c.bf16 %v125_v33, %v124_v32  ;;  %v1722_v40 = vld [vmem:[#allocation4 + $0x40] ss:$8 sps:$4 sm:$0xff]  }
  0x53   :  { %1665 = vmatprep.subr.bf16.mxu0 %v1664_v12  ;;  %v126_v37 = vld [vmem:[#allocation2 + $0x70] sm:$0xff]  ;;  %v127_v38 = vld [vmem:[#allocation2 + $0x78] sm:$0xff]  ;;  %v1730_v49 = vld [vmem:[#allocation4 + $0x64] ss:$8 sps:$4 sm:$0xff]  }
  0x54   :  { %v1684_v41 = vpack.c.bf16 %v127_v38, %v126_v37  ;;  %v1725_v42 = vld [vmem:[#allocation4 + $0x50] ss:$8 sps:$4 sm:$0xff]   ;;  %v1727_v43 = vld [vmem:[#allocation4 + $0x54] ss:$8 sps:$4 sm:$0xff]   ;;  %v1728_v50 = vld [vmem:[#allocation4 + $0x60] ss:$8 sps:$4 sm:$0xff]  }
  0x55   :  { %368 = vmatpush1.bf16.msra.mxu1 %v1713_v25  ;;  %v1733_v51 = vld [vmem:[#allocation4 + $0x74] ss:$8 sps:$4 sm:$0xff]   ;;  %v1731_v52 = vld [vmem:[#allocation4 + $0x70] ss:$8 sps:$4 sm:$0xff]   ;;  %v1830_v33 = vld [vmem:[#allocation7] ss:$8 sps:$4 sm:$0xff]  }
  0x56   :  { %1667 = vmatpush3.bf16.msra.mxu0 %v1664_v12  ;;  %369 = vmatprep.subr.bf16.mxu1 %v1718_v28  ;;  %v1736_v57 = vld [vmem:[#allocation6 + $0x4] ss:$16 sps:$4 sm:$0xff]   ;;  %v1734_v0 = vld [vmem:[#allocation6] ss:$16 sps:$4 sm:$0xff]   ;;  %v1784_v32 = vld [vmem:[#allocation6 + $0xc] ss:$16 sps:$4 sm:$0xff]  }
  0x57   :  { %1669 = vmatprep.subr.bf16.mxu0 %v1668_v21  ;;  %v1739_v2 = vld [vmem:[#allocation6 + $0x24] ss:$16 sps:$4 sm:$0xff]   ;;  %v1737_v3 = vld [vmem:[#allocation6 + $0x20] ss:$16 sps:$4 sm:$0xff]  }
  0x58   :  { %v1742_v4 = vld [vmem:[#allocation6 + $0x44] ss:$16 sps:$4 sm:$0xff]   ;;  %v1740_v5 = vld [vmem:[#allocation6 + $0x40] ss:$16 sps:$4 sm:$0xff]  }
  0x59   :  { %370 = vmatpush1.bf16.msra.mxu1 %v1716_v30  ;;  %v1745_v6 = vld [vmem:[#allocation6 + $0x64] ss:$16 sps:$4 sm:$0xff]   ;;  %v1743_v7 = vld [vmem:[#allocation6 + $0x60] ss:$16 sps:$4 sm:$0xff]  }
  0x5a   :  { %1671 = vmatpush3.bf16.msra.mxu0 %v1668_v21  ;;  %371 = vmatprep.subr.bf16.mxu1 %v1721_v31  ;;  %v1748_v8 = vld [vmem:[#allocation6 + $0x84] ss:$16 sps:$4 sm:$0xff]   ;;  %v1746_v9 = vld [vmem:[#allocation6 + $0x80] ss:$16 sps:$4 sm:$0xff]  }
  0x5b   :  { %1673 = vmatprep.subr.bf16.mxu0 %v1672_v29  ;;  %v1751_v10 = vld [vmem:[#allocation6 + $0xa4] ss:$16 sps:$4 sm:$0xff]   ;;  %v1749_v11 = vld [vmem:[#allocation6 + $0xa0] ss:$16 sps:$4 sm:$0xff]  }
  0x5c   :  { %v1754_v12 = vld [vmem:[#allocation6 + $0xc4] ss:$16 sps:$4 sm:$0xff]   ;;  %v1752_v13 = vld [vmem:[#allocation6 + $0xc0] ss:$16 sps:$4 sm:$0xff]  }
  0x5d   :  { %372 = vmatpush1.bf16.msra.mxu1 %v1719_v35  ;;  %v1757_v14 = vld [vmem:[#allocation6 + $0xe4] ss:$16 sps:$4 sm:$0xff]   ;;  %v1755_v15 = vld [vmem:[#allocation6 + $0xe0] ss:$16 sps:$4 sm:$0xff]  }
  0x5e   :  { %1675 = vmatpush3.bf16.msra.mxu0 %v1672_v29  ;;  %373 = vmatprep.subr.bf16.mxu1 %v1724_v36  ;;  %v1760_v16 = vld [vmem:[#allocation6 + $0x104] ss:$16 sps:$4 sm:$0xff]   ;;  %v1758_v17 = vld [vmem:[#allocation6 + $0x100] ss:$16 sps:$4 sm:$0xff]  }
  0x5f   :  { %1677 = vmatprep.subr.bf16.mxu0 %v1676_v34  ;;  %v1763_v18 = vld [vmem:[#allocation6 + $0x124] ss:$16 sps:$4 sm:$0xff]   ;;  %v1761_v19 = vld [vmem:[#allocation6 + $0x120] ss:$16 sps:$4 sm:$0xff]  }
  0x60   :  { %v1766_v20 = vld [vmem:[#allocation6 + $0x144] ss:$16 sps:$4 sm:$0xff]   ;;  %v1764_v21 = vld [vmem:[#allocation6 + $0x140] ss:$16 sps:$4 sm:$0xff]  }
  0x61   :  { %374 = vmatpush1.bf16.msra.mxu1 %v1722_v40  ;;  %v1769_v22 = vld [vmem:[#allocation6 + $0x164] ss:$16 sps:$4 sm:$0xff]   ;;  %v1767_v23 = vld [vmem:[#allocation6 + $0x160] ss:$16 sps:$4 sm:$0xff]  }
  0x62   :  { %1679 = vmatpush3.bf16.msra.mxu0 %v1676_v34  ;;  %375 = vmatprep.subr.bf16.mxu1 %v1727_v43  ;;  %v1772_v24 = vld [vmem:[#allocation6 + $0x184] ss:$16 sps:$4 sm:$0xff]   ;;  %v1770_v25 = vld [vmem:[#allocation6 + $0x180] ss:$16 sps:$4 sm:$0xff]  }
  0x63   :  { %1681 = vmatprep.subr.bf16.mxu0 %v1680_v39  ;;  %v1775_v26 = vld [vmem:[#allocation6 + $0x1a4] ss:$16 sps:$4 sm:$0xff]   ;;  %v1773_v27 = vld [vmem:[#allocation6 + $0x1a0] ss:$16 sps:$4 sm:$0xff]  }
  0x64   :  { %v1778_v28 = vld [vmem:[#allocation6 + $0x1c4] ss:$16 sps:$4 sm:$0xff]   ;;  %v1776_v29 = vld [vmem:[#allocation6 + $0x1c0] ss:$16 sps:$4 sm:$0xff]  }
  0x65   :  { %376 = vmatpush1.bf16.msra.mxu1 %v1725_v42  ;;  %v1781_v30 = vld [vmem:[#allocation6 + $0x1e4] ss:$16 sps:$4 sm:$0xff]   ;;  %v1779_v31 = vld [vmem:[#allocation6 + $0x1e0] ss:$16 sps:$4 sm:$0xff]  }
  0x66   :  { %1683 = vmatpush3.bf16.msra.mxu0 %v1680_v39  ;;  %377 = vmatprep.subr.bf16.mxu1 %v1730_v49  ;;  %v1832_v34 = vld [vmem:[#allocation7 + $0x4] ss:$8 sps:$4 sm:$0xff]   ;;  %v1835_v35 = vld [vmem:[#allocation7 + $0x14] ss:$8 sps:$4 sm:$0xff]   ;;  %v1833_v36 = vld [vmem:[#allocation7 + $0x10] ss:$8 sps:$4 sm:$0xff]  }
  0x67   :  { %1685 = vmatprep.subr.bf16.mxu0 %v1684_v41  ;;  %v1838_v37 = vld [vmem:[#allocation7 + $0x24] ss:$8 sps:$4 sm:$0xff]   ;;  %v1836_v38 = vld [vmem:[#allocation7 + $0x20] ss:$8 sps:$4 sm:$0xff]   ;;  %v1841_v39 = vld [vmem:[#allocation7 + $0x34] ss:$8 sps:$4 sm:$0xff]  }
  0x68   :  { %v1839_v40 = vld [vmem:[#allocation7 + $0x30] ss:$8 sps:$4 sm:$0xff]   ;;  %v1842_v42 = vld [vmem:[#allocation7 + $0x40] ss:$8 sps:$4 sm:$0xff]   ;;  %v1847_v43 = vld [vmem:[#allocation7 + $0x54] ss:$8 sps:$4 sm:$0xff]  }
  0x69   :  { %378 = vmatpush1.bf16.msra.mxu1 %v1728_v50  ;;  %v1851_v49 = vld [vmem:[#allocation7 + $0x70] ss:$8 sps:$4 sm:$0xff]   ;;  %v1856_v50 = vld [vmem:[#allocation7 + $0x84] ss:$8 sps:$4 sm:$0xff]  }
  0x6a   :  { %1687 = vmatpush3.bf16.msra.mxu0 %v1684_v41  ;;  %379 = vmatprep.subr.bf16.mxu1 %v1733_v51  ;;  %v1844_v41 = vld [vmem:[#allocation7 + $0x44] ss:$8 sps:$4 sm:$0xff]   ;;  %v1854_v51 = vld [vmem:[#allocation7 + $0x80] ss:$8 sps:$4 sm:$0xff]  }
  0x6b   :  { %1314 = vmatprep.subr.bf16.mxu0 %v1832_v34  ;;  %v1811_v34 = vld [vmem:[#allocation6 + $0x12c] ss:$16 sps:$4 sm:$0xff]  }
  0x6d   :  { %380 = vmatpush1.bf16.msra.mxu1 %v1731_v52  ;;  %v1859_v52 = vld [vmem:[#allocation7 + $0x94] ss:$8 sps:$4 sm:$0xff]  }
  0x6e   :  { %820 = vmatprep.subr.bf16.mxu1 %v1736_v57  ;;  %v2184_v57 = vshrl.u32 %v96_v44, 7 }
  0xca   :  { %v100_v46 = vpop.permute.xlu0 %99 }
  0xcb   :  { %vm104_vm2 = vcmp.eq.s32.totalorder %v97_v45, %v100_v46  ;;  %v1850_v46 = vld [vmem:[#allocation7 + $0x64] ss:$8 sps:$4 sm:$0xff]  }
  0xcc   :  { %1647 = vmatprep.mubr.msk.f32.mxu0 %vm104_vm2, %v2047_v47 }
  0xce   :  { %v103_v48 = vpop.permute.xlu0 %102 }
  0xcf   :  { %vm105_vm3 = vcmp.eq.s32.totalorder %v97_v45, %v103_v48  ;;  %v1845_v45 = vld [vmem:[#allocation7 + $0x50] ss:$8 sps:$4 sm:$0xff]   ;;  %v1853_v48 = vld [vmem:[#allocation7 + $0x74] ss:$8 sps:$4 sm:$0xff]  }
  0xd0   :  { %1648 = vmatmul.mubr.msk.f32.vlgmr.msra.gmra.mrb[0].mxu0 %vm105_vm3, %v2047_v47  ;;  %v1848_v47 = vld [vmem:[#allocation7 + $0x60] ss:$8 sps:$4 sm:$0xff]  }
  0xd1   :  { %1315 = vmatpush1.bf16.msra.mxu0 %v1830_v33  ;;  %v1806_v33 = vld [vmem:[#allocation6 + $0x108] ss:$16 sps:$4 sm:$0xff]  }
  0xd2   :  { %1316 = vmatprep.subr.bf16.mxu0 %v1835_v35  ;;  %v1809_v35 = vld [vmem:[#allocation6 + $0x128] ss:$16 sps:$4 sm:$0xff]  }
  0xd5   :  { %1317 = vmatpush1.bf16.msra.mxu0 %v1833_v36  ;;  %v1814_v36 = vld [vmem:[#allocation6 + $0x14c] ss:$16 sps:$4 sm:$0xff]  }
  0xd6   :  { %1318 = vmatprep.subr.bf16.mxu0 %v1838_v37  ;;  %v1812_v37 = vld [vmem:[#allocation6 + $0x148] ss:$16 sps:$4 sm:$0xff]  }
  0xd9   :  { %1319 = vmatpush1.bf16.msra.mxu0 %v1836_v38  ;;  %v1817_v38 = vld [vmem:[#allocation6 + $0x16c] ss:$16 sps:$4 sm:$0xff]  }
  0xda   :  { %1320 = vmatprep.subr.bf16.mxu0 %v1841_v39  ;;  %v1815_v39 = vld [vmem:[#allocation6 + $0x168] ss:$16 sps:$4 sm:$0xff]  }
  0xdd   :  { %1321 = vmatpush1.bf16.msra.mxu0 %v1839_v40  ;;  %v1820_v40 = vld [vmem:[#allocation6 + $0x18c] ss:$16 sps:$4 sm:$0xff]  }
  0xde   :  { %1322 = vmatprep.subr.bf16.mxu0 %v1844_v41  ;;  %v1818_v41 = vld [vmem:[#allocation6 + $0x188] ss:$16 sps:$4 sm:$0xff]  }
  0xe1   :  { %1323 = vmatpush1.bf16.msra.mxu0 %v1842_v42  ;;  %v1823_v42 = vld [vmem:[#allocation6 + $0x1ac] ss:$16 sps:$4 sm:$0xff]  }
  0xe2   :  { %1324 = vmatprep.subr.bf16.mxu0 %v1847_v43  ;;  %v1821_v43 = vld [vmem:[#allocation6 + $0x1a8] ss:$16 sps:$4 sm:$0xff]  }
  0xe5   :  { %1325 = vmatpush1.bf16.msra.mxu0 %v1845_v45  ;;  %v1826_v45 = vld [vmem:[#allocation6 + $0x1cc] ss:$16 sps:$4 sm:$0xff]  }
  0xe6   :  { %1326 = vmatprep.subr.bf16.mxu0 %v1850_v46  ;;  %v1824_v46 = vld [vmem:[#allocation6 + $0x1c8] ss:$16 sps:$4 sm:$0xff]  }
  0xe9   :  { %1327 = vmatpush1.bf16.msra.mxu0 %v1848_v47  ;;  %v1829_v47 = vld [vmem:[#allocation6 + $0x1ec] ss:$16 sps:$4 sm:$0xff]  }
  0xea   :  { %1328 = vmatprep.subr.bf16.mxu0 %v1853_v48  ;;  %v1827_v48 = vld [vmem:[#allocation6 + $0x1e8] ss:$16 sps:$4 sm:$0xff]  }
  0xed   :  { %1329 = vmatpush1.bf16.msra.mxu0 %v1851_v49  ;;  %v1874_v49 = vld [vmem:[#allocation7 + $0xe4] ss:$8 sps:$4 sm:$0xff]  }
  0xee   :  { %1330 = vmatprep.subr.bf16.mxu0 %v1856_v50  ;;  %v1872_v50 = vld [vmem:[#allocation7 + $0xe0] ss:$8 sps:$4 sm:$0xff]  }
  0xf1   :  { %1331 = vmatpush1.bf16.msra.mxu0 %v1854_v51  ;;  %v1877_v51 = vld [vmem:[#allocation7 + $0xf4] ss:$8 sps:$4 sm:$0xff]  }
  0xf2   :  { %1332 = vmatprep.subr.bf16.mxu0 %v1859_v52  ;;  %v1875_v52 = vld [vmem:[#allocation7 + $0xf0] ss:$8 sps:$4 sm:$0xff]  }
 0x123   :  { %v247_v53 = vpop.f32.mrb[0].mxu1 }
 0x124   :  { %v1654_v54 = vpop.f32.mrb[1].mxu1 }
 0x125   :  { %v250_v55 = vpop.f32.mrb[2].mxu1  ;;  %v1862_v54 = vld [vmem:[#allocation7 + $0xa4] ss:$8 sps:$4 sm:$0xff]  }
 0x126   :  { %v1655_v56 = vpop.f32.mrb[3].mxu1 }
 0x127   :  { %v1865_v56 = vld [vmem:[#allocation7 + $0xb4] ss:$8 sps:$4 sm:$0xff]  }
 0x1a3   :  { %v1649_v58 = vpop.f32.mrb[0].mxu0 }
 0x1a4   :  { %v251_v59 = vadd.f32 %v1649_v58, %v250_v55  ;;  %v194_v60 = vpop.f32.mrb[1].mxu0  ;;  %v1860_v55 = vld [vmem:[#allocation7 + $0xa0] ss:$8 sps:$4 sm:$0xff]   ;;  %v1863_v58 = vld [vmem:[#allocation7 + $0xb0] ss:$8 sps:$4 sm:$0xff]  }
 0x1a5   :  { %v248_v61 = vadd.f32 %v247_v53, %v194_v60  ;;  %v1857_v53 = vld [vmem:[#allocation7 + $0x90] ss:$8 sps:$4 sm:$0xff]   ;;  %v2187_v60 = vsub.s32 0, %v2184_v57 }
 0x1a6   :  { %v255_v62 = vmax.f32 %v251_v59, 0.0  ;;  %1333 = vmatpush1.bf16.msra.mxu0 %v1857_v53  ;;  %v1868_v59 = vld [vmem:[#allocation7 + $0xc4] ss:$8 sps:$4 sm:$0xff]  }
 0x1a7   :  { %v254_v63 = vmax.f32 %v248_v61, 0.0  ;;  %1334 = vmatprep.subr.bf16.mxu0 %v1862_v54  ;;  %v273_v61 = vld [vmem:[%s2230_s5] sm:$0x3]  ;;  %v1880_v53 = vld [vmem:[#allocation7 + $0x104] ss:$8 sps:$4 sm:$0xff]  }
 0x1a8   :  { %v278_v44 = vrot.slane %v273_v61, %v2187_v60  ;;  %v2204_v54 = vld [vmem:[%s2232_s7] sm:$0xf] }
 0x1a9   :  { %v256_v1 = vpack.c.bf16 %v255_v62, %v254_v63  ;;  %v2193_v62 = vsub.s32 1, %v2184_v57  ;;  %v1866_v63 = vld [vmem:[#allocation7 + $0xc0] ss:$8 sps:$4 sm:$0xff]  }
 0x1aa   :  { %1335 = vmatpush1.bf16.msra.mxu0 %v1860_v55  ;;  %v483_v55 = vrot.slane %v2204_v54, %v2187_v60 }
 0x1ab   :  { %398 = vmatmul.mubr.bf16.vlgmr.msra.gmra.mrb[4].mxu1 %v256_v1  ;;  %1336 = vmatprep.subr.bf16.mxu0 %v1865_v56  ;;  %v282_v1 = vrot.slane %v273_v61, %v2193_v62  ;;  %v487_v56 = vrot.slane %v2204_v54, %v2193_v62 }
 0x1ac   :  { %821 = vmatpush1.bf16.msra.mxu1 %v1734_v0  ;;  %v1871_v0 = vld [vmem:[#allocation7 + $0xd4] ss:$8 sps:$4 sm:$0xff]  }
 0x1ad   :  { %822 = vmatprep.subr.bf16.mxu1 %v1739_v2  ;;  %v1869_v2 = vld [vmem:[#allocation7 + $0xd0] ss:$8 sps:$4 sm:$0xff]  }
 0x1ae   :  { %1337 = vmatpush1.bf16.msra.mxu0 %v1863_v58 }
 0x1af   :  { %1338 = vmatprep.subr.bf16.mxu0 %v1868_v59 }
 0x1b0   :  { %823 = vmatpush1.bf16.msra.mxu1 %v1737_v3 }
 0x1b1   :  { %824 = vmatprep.subr.bf16.mxu1 %v1742_v4 }
 0x1b2   :  { %1339 = vmatpush1.bf16.msra.mxu0 %v1866_v63 }
 0x1b3   :  { %1340 = vmatprep.subr.bf16.mxu0 %v1871_v0 }
 0x1b4   :  { %825 = vmatpush1.bf16.msra.mxu1 %v1740_v5 }
 0x1b5   :  { %826 = vmatprep.subr.bf16.mxu1 %v1745_v6 }
 0x1b6   :  { %1341 = vmatpush1.bf16.msra.mxu0 %v1869_v2 }
 0x1b7   :  { %1342 = vmatprep.subr.bf16.mxu0 %v1874_v49 }
 0x1b8   :  { %827 = vmatpush1.bf16.msra.mxu1 %v1743_v7 }
 0x1b9   :  { %828 = vmatprep.subr.bf16.mxu1 %v1748_v8 }
 0x1ba   :  { %1343 = vmatpush1.bf16.msra.mxu0 %v1872_v50 }
 0x1bb   :  { %1344 = vmatprep.subr.bf16.mxu0 %v1877_v51  ;;  %v1923_v51 = vld [vmem:[#allocation7 + $0x1f0] ss:$8 sps:$4 sm:$0xff]  }
 0x1bc   :  { %829 = vmatpush1.bf16.msra.mxu1 %v1746_v9 }
 0x1bd   :  { %830 = vmatprep.subr.bf16.mxu1 %v1751_v10 }
 0x1be   :  { %1345 = vmatpush1.bf16.msra.mxu0 %v1875_v52 }
 0x1bf   :  { %1357 = vmatprep.subr.bf16.mxu0 %v1880_v53 }
 0x1c0   :  { %831 = vmatpush1.bf16.msra.mxu1 %v1749_v11 }
 0x1c1   :  { %832 = vmatprep.subr.bf16.mxu1 %v1754_v12 }
 0x1c4   :  { %833 = vmatpush1.bf16.msra.mxu1 %v1752_v13 }
 0x1c5   :  { %834 = vmatprep.subr.bf16.mxu1 %v1757_v14 }
 0x1c8   :  { %835 = vmatpush1.bf16.msra.mxu1 %v1755_v15 }
 0x1c9   :  { %836 = vmatprep.subr.bf16.mxu1 %v1760_v16 }
 0x1cc   :  { %837 = vmatpush1.bf16.msra.mxu1 %v1758_v17  ;;  %v1782_v17 = vld [vmem:[#allocation6 + $0x8] ss:$16 sps:$4 sm:$0xff]  }
 0x1cd   :  { %838 = vmatprep.subr.bf16.mxu1 %v1763_v18  ;;  %v1787_v18 = vld [vmem:[#allocation6 + $0x2c] ss:$16 sps:$4 sm:$0xff]  }
 0x1d0   :  { %839 = vmatpush1.bf16.msra.mxu1 %v1761_v19  ;;  %v1785_v19 = vld [vmem:[#allocation6 + $0x28] ss:$16 sps:$4 sm:$0xff]  }
 0x1d1   :  { %840 = vmatprep.subr.bf16.mxu1 %v1766_v20  ;;  %v1790_v20 = vld [vmem:[#allocation6 + $0x4c] ss:$16 sps:$4 sm:$0xff]  }
 0x1d4   :  { %841 = vmatpush1.bf16.msra.mxu1 %v1764_v21  ;;  %v1788_v21 = vld [vmem:[#allocation6 + $0x48] ss:$16 sps:$4 sm:$0xff]  }
 0x1d5   :  { %842 = vmatprep.subr.bf16.mxu1 %v1769_v22  ;;  %v1793_v22 = vld [vmem:[#allocation6 + $0x6c] ss:$16 sps:$4 sm:$0xff]  }
 0x1d8   :  { %843 = vmatpush1.bf16.msra.mxu1 %v1767_v23  ;;  %v1791_v23 = vld [vmem:[#allocation6 + $0x68] ss:$16 sps:$4 sm:$0xff]  }
 0x1d9   :  { %844 = vmatprep.subr.bf16.mxu1 %v1772_v24  ;;  %v1796_v24 = vld [vmem:[#allocation6 + $0x8c] ss:$16 sps:$4 sm:$0xff]  }
 0x1dc   :  { %845 = vmatpush1.bf16.msra.mxu1 %v1770_v25  ;;  %v1794_v25 = vld [vmem:[#allocation6 + $0x88] ss:$16 sps:$4 sm:$0xff]  }
 0x1dd   :  { %846 = vmatprep.subr.bf16.mxu1 %v1775_v26  ;;  %v1799_v26 = vld [vmem:[#allocation6 + $0xac] ss:$16 sps:$4 sm:$0xff]  }
 0x1e0   :  { %847 = vmatpush1.bf16.msra.mxu1 %v1773_v27  ;;  %v1797_v27 = vld [vmem:[#allocation6 + $0xa8] ss:$16 sps:$4 sm:$0xff]  }
 0x1e1   :  { %848 = vmatprep.subr.bf16.mxu1 %v1778_v28  ;;  %v1802_v28 = vld [vmem:[#allocation6 + $0xcc] ss:$16 sps:$4 sm:$0xff]  }
 0x1e4   :  { %849 = vmatpush1.bf16.msra.mxu1 %v1776_v29  ;;  %v1800_v29 = vld [vmem:[#allocation6 + $0xc8] ss:$16 sps:$4 sm:$0xff]  }
 0x1e5   :  { %850 = vmatprep.subr.bf16.mxu1 %v1781_v30  ;;  %v1805_v30 = vld [vmem:[#allocation6 + $0xec] ss:$16 sps:$4 sm:$0xff]  }
 0x1e8   :  { %851 = vmatpush1.bf16.msra.mxu1 %v1779_v31  ;;  %v1803_v31 = vld [vmem:[#allocation6 + $0xe8] ss:$16 sps:$4 sm:$0xff]  }
 0x1e9   :  { %863 = vmatprep.subr.bf16.mxu1 %v1784_v32  ;;  %v1808_v32 = vld [vmem:[#allocation6 + $0x10c] ss:$16 sps:$4 sm:$0xff]  }
 0x27e   :  { %v399_v3 = vpop.f32.mrb[4].mxu1 }
 0x27f   :  { %v400_v4 = vadd.f32 %v399_v3, %v278_v44  ;;  %v401_v5 = vpop.f32.mrb[5].mxu1 }
 0x280   :  { %v402_v6 = vadd.f32 %v401_v5, %v282_v1  ;;  %v403_v7 = vpop.f32.mrb[6].mxu1 }
 0x281   :  { %v404_v8 = vadd.f32 %v403_v7, %v278_v44  ;;  %v405_v9 = vpop.f32.mrb[7].mxu1  ;;  %v408_v11 = vmax.f32 %v400_v4, 0.0 }
 0x282   :  { %v406_v10 = vadd.f32 %v405_v9, %v282_v1  ;;  %v409_v13 = vmax.f32 %v402_v6, 0.0  ;;  %v1878_v9 = vld [vmem:[#allocation7 + $0x100] ss:$8 sps:$4 sm:$0xff]  }
 0x283   :  { %v410_v12 = vmax.f32 %v404_v8, 0.0 }
 0x284   :  { %v411_v14 = vmax.f32 %v406_v10, 0.0  ;;  %v1883_v10 = vld [vmem:[#allocation7 + $0x114] ss:$8 sps:$4 sm:$0xff]  }
 0x285   :  { %v2197_v15 = vpack.c.bf16 %v410_v12, %v408_v11  ;;  %v1881_v11 = vld [vmem:[#allocation7 + $0x110] ss:$8 sps:$4 sm:$0xff]   ;;  %v1886_v12 = vld [vmem:[#allocation7 + $0x124] ss:$8 sps:$4 sm:$0xff]  }
 0x286   :  { %v413_v16 = vpack.c.bf16 %v411_v14, %v409_v13  ;;  %v1884_v13 = vld [vmem:[#allocation7 + $0x120] ss:$8 sps:$4 sm:$0xff]   ;;  %v1889_v14 = vld [vmem:[#allocation7 + $0x134] ss:$8 sps:$4 sm:$0xff]  }
 0x288   :  { %852 = vmatprep.mubr.bf16.mxu1 %v413_v16 }
 0x289   :  { %853 = vmatmul.mubr.bf16.vlgmr.msra.gmra.mrb[8].mxu1 %v2197_v15 }
 0x28a   :  { %864 = vmatpush1.bf16.msra.mxu1 %v1782_v17  ;;  %895 = vmatprep.mubr.bf16.mxu1 %v413_v16  ;;  %v1892_v16 = vld [vmem:[#allocation7 + $0x144] ss:$8 sps:$4 sm:$0xff]   ;;  %v1890_v17 = vld [vmem:[#allocation7 + $0x140] ss:$8 sps:$4 sm:$0xff]  }
 0x28b   :  { %865 = vmatprep.subr.bf16.mxu1 %v1787_v18  ;;  %v1895_v18 = vld [vmem:[#allocation7 + $0x154] ss:$8 sps:$4 sm:$0xff]  }
 0x28e   :  { %866 = vmatpush1.bf16.msra.mxu1 %v1785_v19  ;;  %v1893_v19 = vld [vmem:[#allocation7 + $0x150] ss:$8 sps:$4 sm:$0xff]  }
 0x28f   :  { %867 = vmatprep.subr.bf16.mxu1 %v1790_v20  ;;  %v1898_v20 = vld [vmem:[#allocation7 + $0x164] ss:$8 sps:$4 sm:$0xff]  }
 0x292   :  { %868 = vmatpush1.bf16.msra.mxu1 %v1788_v21  ;;  %v1896_v21 = vld [vmem:[#allocation7 + $0x160] ss:$8 sps:$4 sm:$0xff]  }
 0x293   :  { %869 = vmatprep.subr.bf16.mxu1 %v1793_v22  ;;  %v1901_v22 = vld [vmem:[#allocation7 + $0x174] ss:$8 sps:$4 sm:$0xff]  }
 0x296   :  { %870 = vmatpush1.bf16.msra.mxu1 %v1791_v23  ;;  %v1899_v23 = vld [vmem:[#allocation7 + $0x170] ss:$8 sps:$4 sm:$0xff]  }
 0x297   :  { %871 = vmatprep.subr.bf16.mxu1 %v1796_v24  ;;  %v1904_v24 = vld [vmem:[#allocation7 + $0x184] ss:$8 sps:$4 sm:$0xff]  }
 0x29a   :  { %872 = vmatpush1.bf16.msra.mxu1 %v1794_v25  ;;  %v1902_v25 = vld [vmem:[#allocation7 + $0x180] ss:$8 sps:$4 sm:$0xff]  }
 0x29b   :  { %873 = vmatprep.subr.bf16.mxu1 %v1799_v26  ;;  %v1907_v26 = vld [vmem:[#allocation7 + $0x194] ss:$8 sps:$4 sm:$0xff]  }
 0x29e   :  { %874 = vmatpush1.bf16.msra.mxu1 %v1797_v27  ;;  %v1905_v27 = vld [vmem:[#allocation7 + $0x190] ss:$8 sps:$4 sm:$0xff]  }
 0x29f   :  { %875 = vmatprep.subr.bf16.mxu1 %v1802_v28  ;;  %v1910_v28 = vld [vmem:[#allocation7 + $0x1a4] ss:$8 sps:$4 sm:$0xff]  }
 0x2a2   :  { %876 = vmatpush1.bf16.msra.mxu1 %v1800_v29  ;;  %v1908_v29 = vld [vmem:[#allocation7 + $0x1a0] ss:$8 sps:$4 sm:$0xff]  }
 0x2a3   :  { %877 = vmatprep.subr.bf16.mxu1 %v1805_v30  ;;  %v1913_v30 = vld [vmem:[#allocation7 + $0x1b4] ss:$8 sps:$4 sm:$0xff]  }
 0x2a6   :  { %878 = vmatpush1.bf16.msra.mxu1 %v1803_v31  ;;  %v1911_v31 = vld [vmem:[#allocation7 + $0x1b0] ss:$8 sps:$4 sm:$0xff]  }
 0x2a7   :  { %879 = vmatprep.subr.bf16.mxu1 %v1808_v32  ;;  %v1916_v32 = vld [vmem:[#allocation7 + $0x1c4] ss:$8 sps:$4 sm:$0xff]  }
 0x2aa   :  { %880 = vmatpush1.bf16.msra.mxu1 %v1806_v33  ;;  %v1914_v33 = vld [vmem:[#allocation7 + $0x1c0] ss:$8 sps:$4 sm:$0xff]  }
 0x2ab   :  { %881 = vmatprep.subr.bf16.mxu1 %v1811_v34  ;;  %v1919_v34 = vld [vmem:[#allocation7 + $0x1d4] ss:$8 sps:$4 sm:$0xff]  }
 0x2ae   :  { %882 = vmatpush1.bf16.msra.mxu1 %v1809_v35  ;;  %v490_v35 = vsub.s32 2, %v2184_v57 }
 0x2af   :  { %883 = vmatprep.subr.bf16.mxu1 %v1814_v36  ;;  %v494_v36 = vsub.s32 3, %v2184_v57 }
 0x2b2   :  { %884 = vmatpush1.bf16.msra.mxu1 %v1812_v37  ;;  %v1917_v37 = vld [vmem:[#allocation7 + $0x1d0] ss:$8 sps:$4 sm:$0xff]  }
 0x2b3   :  { %885 = vmatprep.subr.bf16.mxu1 %v1817_v38  ;;  %v491_v38 = vrot.slane %v2204_v54, %v490_v35 }
 0x2b6   :  { %886 = vmatpush1.bf16.msra.mxu1 %v1815_v39  ;;  %v1922_v39 = vld [vmem:[#allocation7 + $0x1e4] ss:$8 sps:$4 sm:$0xff]  }
 0x2b7   :  { %887 = vmatprep.subr.bf16.mxu1 %v1820_v40  ;;  %v495_v40 = vrot.slane %v2204_v54, %v494_v36 }
 0x2ba   :  { %888 = vmatpush1.bf16.msra.mxu1 %v1818_v41 }
 0x2bb   :  { %889 = vmatprep.subr.bf16.mxu1 %v1823_v42  ;;  %v1920_v42 = vld [vmem:[#allocation7 + $0x1e0] ss:$8 sps:$4 sm:$0xff]  }
 0x2be   :  { %890 = vmatpush1.bf16.msra.mxu1 %v1821_v43 }
 0x2bf   :  { %891 = vmatprep.subr.bf16.mxu1 %v1826_v45 }
 0x2c2   :  { %892 = vmatpush1.bf16.msra.mxu1 %v1824_v46  ;;  %v1925_v46 = vld [vmem:[#allocation7 + $0x1f4] ss:$8 sps:$4 sm:$0xff]  }
 0x2c3   :  { %893 = vmatprep.subr.bf16.mxu1 %v1829_v47 }
 0x2c6   :  { %894 = vmatpush1.bf16.msra.mxu1 %v1827_v48 }
 0x2c9   :  { %896 = vmatmul.mubr.bf16.vlgmr.msra.gmra.mrb[12].mxu1 %v2197_v15  ;;  %v1887_v15 = vld [vmem:[#allocation7 + $0x130] ss:$8 sps:$4 sm:$0xff]  }
 0x35c   :  { %v854_v58 = vpop.f32.mrb[8].mxu1 }
 0x35d   :  { %v855_v59 = vadd.f32 %v854_v58, %v483_v55  ;;  %v856_v61 = vpop.f32.mrb[9].mxu1 }
 0x35e   :  { %v857_v63 = vadd.f32 %v856_v61, %v487_v56  ;;  %v858_v0 = vpop.f32.mrb[10].mxu1 }
 0x35f   :  { %v859_v44 = vadd.f32 %v858_v0, %v483_v55  ;;  %v860_v1 = vpop.f32.mrb[11].mxu1  ;;  %v906_v3 = vmax.f32 %v855_v59, 0.0  ;;  %v982_v59 = vld [vmem:[%s2234_s9] sm:$0x3] }
 0x360   :  { %v861_v2 = vadd.f32 %v860_v1, %v487_v56  ;;  %v907_v5 = vmax.f32 %v857_v63, 0.0  ;;  %v987_v61 = vrot.slane %v982_v59, %v2187_v60  ;;  %v991_v63 = vrot.slane %v982_v59, %v2193_v62 }
 0x361   :  { %v910_v4 = vmax.f32 %v859_v44, 0.0 }
 0x362   :  { %v911_v6 = vmax.f32 %v861_v2, 0.0 }
 0x363   :  { %v914_v7 = vpack.c.bf16 %v910_v4, %v906_v3 }
 0x364   :  { %v915_v8 = vpack.c.bf16 %v911_v6, %v907_v5 }
 0x366   :  { %1346 = vmatprep.mubr.bf16.mxu0 %v915_v8 }
 0x367   :  { %1347 = vmatmul.mubr.bf16.vlgmr.msra.gmra.mrb[4].mxu0 %v914_v7 }
 0x368   :  { %1358 = vmatpush1.bf16.msra.mxu0 %v1878_v9 }
 0x369   :  { %1359 = vmatprep.subr.bf16.mxu0 %v1883_v10 }
 0x36c   :  { %1360 = vmatpush1.bf16.msra.mxu0 %v1881_v11 }
 0x36d   :  { %1361 = vmatprep.subr.bf16.mxu0 %v1886_v12 }
 0x370   :  { %1362 = vmatpush1.bf16.msra.mxu0 %v1884_v13 }
 0x371   :  { %1363 = vmatprep.subr.bf16.mxu0 %v1889_v14 }
 0x374   :  { %1364 = vmatpush1.bf16.msra.mxu0 %v1887_v15 }
 0x375   :  { %1365 = vmatprep.subr.bf16.mxu0 %v1892_v16 }
 0x378   :  { %1366 = vmatpush1.bf16.msra.mxu0 %v1890_v17 }
 0x379   :  { %1367 = vmatprep.subr.bf16.mxu0 %v1895_v18 }
 0x37c   :  { %1368 = vmatpush1.bf16.msra.mxu0 %v1893_v19 }
 0x37d   :  { %1369 = vmatprep.subr.bf16.mxu0 %v1898_v20 }
 0x380   :  { %1370 = vmatpush1.bf16.msra.mxu0 %v1896_v21 }
 0x381   :  { %1371 = vmatprep.subr.bf16.mxu0 %v1901_v22 }
 0x384   :  { %1372 = vmatpush1.bf16.msra.mxu0 %v1899_v23 }
 0x385   :  { %1373 = vmatprep.subr.bf16.mxu0 %v1904_v24 }
 0x388   :  { %1374 = vmatpush1.bf16.msra.mxu0 %v1902_v25 }
 0x389   :  { %1375 = vmatprep.subr.bf16.mxu0 %v1907_v26 }
 0x38c   :  { %1376 = vmatpush1.bf16.msra.mxu0 %v1905_v27 }
 0x38d   :  { %1377 = vmatprep.subr.bf16.mxu0 %v1910_v28 }
 0x390   :  { %1378 = vmatpush1.bf16.msra.mxu0 %v1908_v29 }
 0x391   :  { %1379 = vmatprep.subr.bf16.mxu0 %v1913_v30 }
 0x394   :  { %1380 = vmatpush1.bf16.msra.mxu0 %v1911_v31 }
 0x395   :  { %1381 = vmatprep.subr.bf16.mxu0 %v1916_v32 }
 0x398   :  { %1382 = vmatpush1.bf16.msra.mxu0 %v1914_v33 }
 0x399   :  { %1383 = vmatprep.subr.bf16.mxu0 %v1919_v34 }
 0x39c   :  { %v897_v41 = vpop.f32.mrb[12].mxu1  ;;  %1384 = vmatpush1.bf16.msra.mxu0 %v1917_v37 }
 0x39d   :  { %v898_v43 = vadd.f32 %v897_v41, %v491_v38  ;;  %v899_v45 = vpop.f32.mrb[13].mxu1  ;;  %1385 = vmatprep.subr.bf16.mxu0 %v1922_v39 }
 0x39e   :  { %v900_v47 = vadd.f32 %v899_v45, %v495_v40  ;;  %v901_v48 = vpop.f32.mrb[14].mxu1 }
 0x39f   :  { %v902_v49 = vadd.f32 %v901_v48, %v491_v38  ;;  %v903_v50 = vpop.f32.mrb[15].mxu1  ;;  %v908_v52 = vmax.f32 %v898_v43, 0.0 }
 0x3a0   :  { %v904_v57 = vadd.f32 %v903_v50, %v495_v40  ;;  %1386 = vmatpush1.bf16.msra.mxu0 %v1920_v42  ;;  %v909_v55 = vmax.f32 %v900_v47, 0.0 }
 0x3a1   :  { %v912_v53 = vmax.f32 %v902_v49, 0.0  ;;  %1387 = vmatprep.subr.bf16.mxu0 %v1925_v46 }
 0x3a2   :  { %v913_v56 = vmax.f32 %v904_v57, 0.0 }
 0x3a3   :  { %v916_v54 = vpack.c.bf16 %v912_v53, %v908_v52 }
 0x3a4   :  { %v917_v58 = vpack.c.bf16 %v913_v56, %v909_v55  ;;  %1388 = vmatpush1.bf16.msra.mxu0 %v1923_v51 }
 0x3a6   :  { %1389 = vmatprep.mubr.bf16.mxu0 %v917_v58 }
 0x3a7   :  { %1390 = vmatmul.mubr.bf16.vlgmr.msra.gmra.mrb[4].mxu0 %v916_v54 }
 0x47a   :  { %v1391_v0 = vpop.f32.mrb[4].mxu0 }
 0x47b   :  { %v1688_v44 = vadd.f32 %v1391_v0, %v987_v61  ;;  %v1393_v1 = vpop.f32.mrb[5].mxu0 }
 0x47c   :  { %v1689_v2 = vadd.f32 %v1393_v1, %v991_v63  ;;  %v1395_v3 = vpop.f32.mrb[6].mxu0 }
 0x47d   :  { %v1400_v4 = vsub.f32 0.0, %v1688_v44  ;;  %v1690_v5 = vadd.f32 %v1395_v3, %v987_v61  ;;  %v1397_v6 = vpop.f32.mrb[7].mxu0 }
 0x47e   :  { %v1401_v7 = vsub.f32 0.0, %v1689_v2  ;;  %v1691_v8 = vadd.f32 %v1397_v6, %v991_v63 }
 0x47f   :  { %v1404_v9 = vmul.f32 1.442695, %v1400_v4  ;;  %v1402_v10 = vsub.f32 0.0, %v1690_v5 }
 0x480   :  { %v1406_v11 = vmul.f32 1.442695, %v1401_v7  ;;  %v1403_v12 = vsub.f32 0.0, %v1691_v8 }
 0x481   :  { %1926 = vpow2.f32 %v1404_v9  ;;  %v1408_v13 = vmul.f32 1.442695, %v1402_v10 }
 0x482   :  { %1928 = vpow2.f32 %v1406_v11  ;;  %v1410_v60 = vmul.f32 1.442695, %v1403_v12 }
 0x483   :  { %1930 = vpow2.f32 %v1408_v13 }
 0x484   :  { %1932 = vpow2.f32 %v1410_v60 }
 0x48b   :  { %v1927_v62 = vpop.eup %1926 }
 0x48c   :  { %v1929_v14 = vpop.eup %1928  ;;  %v1412_v15 = vadd.f32 1.0, %v1927_v62 }
 0x48d   :  { %v1931_v16 = vpop.eup %1930  ;;  %v1413_v17 = vadd.f32 1.0, %v1929_v14 }
 0x48e   :  { %v1933_v18 = vpop.eup %1932  ;;  %1934 = vrcp.f32 %v1412_v15  ;;  %v1414_v19 = vadd.f32 1.0, %v1931_v16 }
 0x48f   :  { %1936 = vrcp.f32 %v1413_v17  ;;  %v1415_v20 = vadd.f32 1.0, %v1933_v18 }
 0x490   :  { %1938 = vrcp.f32 %v1414_v19 }
 0x491   :  { %1940 = vrcp.f32 %v1415_v20 }
 0x498   :  { %v1935_v21 = vpop.eup %1934 }
 0x499   :  { %v1937_v22 = vpop.eup %1936 }
 0x49a   :  { %v1939_v23 = vpop.eup %1938  ;;  %v1593_v24 = vpack.c.bf16 %v1937_v22, %v1935_v21 }
 0x49b   :  { %v1941_v25 = vpop.eup %1940 }
 0x49c   :  { %1432 = vst [vmem:[%s2235_s10] sm:$0xff] %v1593_v24  ;;  %v1594_v26 = vpack.c.bf16 %v1941_v25, %v1939_v23 }
 0x49e   :  { %1433 = vst [vmem:[%s2235_s10 + $0x8] sm:$0xff] %v1594_v26 }
 0x49f   :  { %1438 = vsyncpa [#allocation3], 1 }
 0x4a0   :  { %1439 = vsyncpa [#allocation5], 1 }
 0x4a1   :  { %1440 = vsyncpa [#allocation8], 1 }

</bundles_post_ra>
